<compile_context>
chip_gen: v5e
topology: v5e:2x2
jax: 0.10.0
libtpu: 0.0.40
codegen_flags: <defaults>
</compile_context>

<pallas_src>
import functools

import jax
import jax.numpy as jnp
from jax.experimental import pallas as pl
from jax.experimental.pallas import tpu as pltpu


def _round_up(n: int, m: int) -> int:
    return ((n + m - 1) // m) * m


def _pad2d(a, rows: int, cols: int):
    r, c = a.shape
    if (r, c) == (rows, cols):
        return a
    return jnp.pad(a, ((0, rows - r), (0, cols - c)))


def _seresnet_kernel(
    x_ref,
    w_in_ref, b_in_ref,
    w_r1_ref, b_r1_ref,
    w_r2_ref, b_r2_ref,
    w_se1_ref, b_se1_ref,
    w_se2_ref, b_se2_ref,
    w_out_ref, b_out_ref,
    o_ref,
    *, act_dtype,
):
    def dense(a, w_ref, b_ref, out_dtype):
        # MXU matmul in the weights' compute dtype, f32 accumulation,
        # f32 bias add, then cast to the requested activation dtype.
        y = jnp.dot(a.astype(w_ref.dtype), w_ref[...],
                    preferred_element_type=jnp.float32) + b_ref[...]
        return y.astype(out_dtype)

    x = x_ref[...]  # f32 tile; cast to the compute dtype inside dense()

    # fc_in + ReLU
    h = jnp.maximum(dense(x, w_in_ref, b_in_ref, act_dtype), 0)

    # residual block: relu(fc_res1(h)) -> fc_res2 -> add residual -> relu
    r = jnp.maximum(dense(h, w_r1_ref, b_r1_ref, act_dtype), 0)
    r = dense(r, w_r2_ref, b_r2_ref, act_dtype)
    out = jnp.maximum(h + r, 0)

    # squeeze-excite gate (per-sample vector; no pooling needed)
    s = jnp.maximum(dense(out, w_se1_ref, b_se1_ref, act_dtype), 0)
    g = jax.nn.sigmoid(dense(s, w_se2_ref, b_se2_ref, act_dtype))
    out = out * g

    # fc_out: true N = embed_dim (unpadded output slab, minimal HBM writeback)
    o_ref[...] = dense(out, w_out_ref, b_out_ref, jnp.float32).astype(o_ref.dtype)


def _chip_info():
    """Best-effort TPU generation / VMEM capacity query (safe fallbacks)."""
    try:
        phys_vmem = int(pltpu.get_tpu_info().vmem_capacity_bytes)
    except Exception:
        phys_vmem = 64 << 20  # v7x per-TC capacity; conservative for v5e/v6e
    try:
        kind = jax.devices()[0].device_kind.lower()
    except Exception:
        kind = ""
    is_v5 = "v5" in kind
    default_scoped = (16 << 20) if is_v5 else (32 << 20)
    return phys_vmem, default_scoped, is_v5


def _pick_batch_tile(batch: int, requested: int) -> int:
    if batch <= 8:
        return batch  # full-extent block, no ragged edge
    bt = min(requested, _round_up(batch, 8))
    if batch >= 256:
        # >= 2 grid steps so v7x's second TensorCore gets a share, while
        # keeping M >= 128 so the MXU stays filled on v6e/v7x.
        bt = min(bt, max(128, _round_up((batch + 1) // 2, 8)))
    return bt


def se_resnet_forward(x, params, *, batch_tile=256, compute_dtype=jnp.bfloat16,
                      act_dtype=None, out_dtype=jnp.float32):
    """x: (batch, in_features) f32 -> (batch, embed_dim) out_dtype."""
    batch, in_features = x.shape
    hidden_dim = params["w_in"].shape[1]
    se_dim = params["w_se1"].shape[1]
    embed_dim = params["w_out"].shape[1]

    phys_vmem, default_scoped, is_v5 = _chip_info()
    if act_dtype is None:
        # v5e has no bf16 VPU/EUP path -> keep elementwise math in f32 there;
        # on v6e/v7x bf16 activations halve resident vregs at large M tiles.
        act_dtype = jnp.float32 if is_v5 else compute_dtype

    citem = jnp.dtype(compute_dtype).itemsize
    sublane = {1: 32, 2: 16, 4: 8}.get(citem, 8)

    # Hardware-friendly padded dims. Padding is exact: padded weight rows/cols
    # are zero, so padded lanes stay 0 through ReLU/residual, and the SE gate's
    # padded sigmoid lanes (0.5) multiply activations that are exactly 0.
    in_pad = _round_up(in_features, sublane)  # sublane-aligned contraction dim
    hid_pad = _round_up(hidden_dim, 128)      # lane-dense intermediates
    se_pad = _round_up(se_dim, 128)           # lane-dense SE bottleneck

    # x stays f32 and un-padded along batch (no extra HBM pad/cast pass).
    # Feature-dim pad only happens when in_features is misaligned.
    x_in = x
    if in_pad != in_features:
        x_in = jnp.pad(x, ((0, 0), (0, in_pad - in_features)))

    def wmat(name, rows, cols):
        return _pad2d(params[name], rows, cols).astype(compute_dtype)

    def bvec(name, cols):
        return _pad2d(params[name], 1, cols).astype(jnp.float32)

    w_in = wmat("w_in", in_pad, hid_pad);      b_in = bvec("b_in", hid_pad)
    w_r1 = wmat("w_r1", hid_pad, hid_pad);     b_r1 = bvec("b_r1", hid_pad)
    w_r2 = wmat("w_r2", hid_pad, hid_pad);     b_r2 = bvec("b_r2", hid_pad)
    w_se1 = wmat("w_se1", hid_pad, se_pad);    b_se1 = bvec("b_se1", se_pad)
    w_se2 = wmat("w_se2", se_pad, hid_pad);    b_se2 = bvec("b_se2", hid_pad)
    w_out = wmat("w_out", hid_pad, embed_dim); b_out = bvec("b_out", embed_dim)

    bt = _pick_batch_tile(batch, batch_tile)
    grid = (pl.cdiv(batch, bt),)

    def _rep(shape):
        # Constant index_map -> the block never changes; single-buffer it so
        # the never-used second pipeline buffer doesn't eat VMEM.
        try:
            return pl.BlockSpec(shape, lambda i: (0, 0),
                                pipeline_mode=pl.Buffered(1))
        except Exception:  # older Pallas without pipeline_mode support
            return pl.BlockSpec(shape, lambda i: (0, 0))

    in_specs = [
        pl.BlockSpec((bt, in_pad), lambda i: (i, 0)),       # x tile
        _rep((in_pad, hid_pad)), _rep((1, hid_pad)),        # fc_in
        _rep((hid_pad, hid_pad)), _rep((1, hid_pad)),       # fc_res1
        _rep((hid_pad, hid_pad)), _rep((1, hid_pad)),       # fc_res2
        _rep((hid_pad, se_pad)), _rep((1, se_pad)),         # se_fc1
        _rep((se_pad, hid_pad)), _rep((1, hid_pad)),        # se_fc2
        _rep((hid_pad, embed_dim)), _rep((1, embed_dim)),   # fc_out
    ]
    out_specs = pl.BlockSpec((bt, embed_dim), lambda i: (i, 0))

    # VMEM footprint: weights/biases single-buffered, x/out double-buffered.
    weight_bytes = citem * (in_pad * hid_pad + 2 * hid_pad * hid_pad
                            + 2 * hid_pad * se_pad + hid_pad * embed_dim)
    bias_bytes = 4 * (4 * hid_pad + se_pad + embed_dim)
    io_bytes = 2 * bt * 4 * (in_pad + embed_dim)
    est_vmem = weight_bytes + bias_bytes + io_bytes

    cp_kwargs = dict(dimension_semantics=("parallel",))
    if est_vmem > (default_scoped * 3) // 4:
        # Raise the scoped limit, but never past ~80% of physical VMEM
        # (v7x only has 64 MiB per TensorCore).
        cp_kwargs["vmem_limit_bytes"] = int(
            min(max(2 * est_vmem, default_scoped), (phys_vmem * 4) // 5))

    kernel = functools.partial(_seresnet_kernel, act_dtype=act_dtype)
    return pl.pallas_call(
        kernel,
        out_shape=jax.ShapeDtypeStruct((batch, embed_dim), out_dtype),
        grid=grid,
        in_specs=in_specs,
        out_specs=out_specs,
        compiler_params=pltpu.CompilerParams(**cp_kwargs),
    )(
        x_in,
        w_in, b_in,
        w_r1, b_r1,
        w_r2, b_r2,
        w_se1, b_se1,
        w_se2, b_se2,
        w_out, b_out,
    )


def init_params(key, in_features, embed_dim, hidden_dim=64, reduction=16):
    """Deterministic synthetic parameter init (not a checkpoint load)."""
    se_dim = max(hidden_dim // reduction, 1)
    shapes = {
        "w_in": (in_features, hidden_dim), "b_in": (1, hidden_dim),
        "w_r1": (hidden_dim, hidden_dim), "b_r1": (1, hidden_dim),
        "w_r2": (hidden_dim, hidden_dim), "b_r2": (1, hidden_dim),
        "w_se1": (hidden_dim, se_dim), "b_se1": (1, se_dim),
        "w_se2": (se_dim, hidden_dim), "b_se2": (1, hidden_dim),
        "w_out": (hidden_dim, embed_dim), "b_out": (1, embed_dim),
    }
    params = {}
    for i, (name, shape) in enumerate(sorted(shapes.items())):
        k = jax.random.fold_in(key, i)
        scale = 0.1 if name.startswith("w") else 0.01
        params[name] = scale * jax.random.normal(k, shape, dtype=jnp.float32)
    return params


def reference_forward(x, params):
    """Pure-JAX f32 reference for correctness checks."""
    h = jax.nn.relu(x @ params["w_in"] + params["b_in"])
    r = jax.nn.relu(h @ params["w_r1"] + params["b_r1"])
    r = r @ params["w_r2"] + params["b_r2"]
    out = jax.nn.relu(h + r)
    g = jax.nn.relu(out @ params["w_se1"] + params["b_se1"])
    g = jax.nn.sigmoid(g @ params["w_se2"] + params["b_se2"])
    out = out * g
    return out @ params["w_out"] + params["b_out"]


if __name__ == "__main__":
    in_features = 16
    embed_dim = 32
    hidden_dim = 64
    reduction = 16

    key = jax.random.PRNGKey(0)
    kx, kp = jax.random.split(key)
    params = init_params(kp, in_features, embed_dim, hidden_dim, reduction)

    # (batch, matmul compute dtype, atol, rtol)
    cases = [
        (2, jnp.float32, 1e-4, 1e-4),     # exact-path sanity check
        (2, jnp.bfloat16, 5e-2, 5e-2),    # bf16 MXU + bf16 activations path
        (257, jnp.bfloat16, 5e-2, 5e-2),  # multi-step grid + ragged last tile
    ]
    for idx, (batch, cdt, atol, rtol) in enumerate(cases):
        x = jax.random.normal(
            jax.random.fold_in(kx, idx), (batch, in_features), dtype=jnp.float32
        )
        y = jax.block_until_ready(se_resnet_forward(x, params, compute_dtype=cdt))
        y_ref = reference_forward(x, params)
        assert y.shape == (batch, embed_dim), f"bad shape in case {idx}"
        assert jnp.allclose(y, y_ref, atol=atol, rtol=rtol), (
            f"mismatch vs reference in case {idx}"
        )

    print("KERNEL_OK")
</pallas_src>

<mosaic_0001>
module attributes {stable_mosaic.version = 11 : i64} {
  func.func @_seresnet_kernel(%arg0: i32, %arg1: memref<2x16xf32, #tpu.memory_space<vmem>>, %arg2: memref<16x128xf32, #tpu.memory_space<vmem>>, %arg3: memref<1x128xf32, #tpu.memory_space<vmem>>, %arg4: memref<128x128xf32, #tpu.memory_space<vmem>>, %arg5: memref<1x128xf32, #tpu.memory_space<vmem>>, %arg6: memref<128x128xf32, #tpu.memory_space<vmem>>, %arg7: memref<1x128xf32, #tpu.memory_space<vmem>>, %arg8: memref<128x128xf32, #tpu.memory_space<vmem>>, %arg9: memref<1x128xf32, #tpu.memory_space<vmem>>, %arg10: memref<128x128xf32, #tpu.memory_space<vmem>>, %arg11: memref<1x128xf32, #tpu.memory_space<vmem>>, %arg12: memref<128x32xf32, #tpu.memory_space<vmem>>, %arg13: memref<1x32xf32, #tpu.memory_space<vmem>>, %arg14: memref<2x32xf32, #tpu.memory_space<vmem>>) attributes {dimension_semantics = [#tpu.dimension_semantics<parallel>], iteration_bounds = array<i64: 1>, scalar_prefetch = 0 : i64, scratch_operands = 0 : i64, tpu.core_type = #tpu.core_type<tc>, window_params = [{transform_indices = @transform_0, window_bounds = array<i64: 2, 16>}, {pipeline_mode = #tpu.pipeline_mode<synchronous>, transform_indices = @transform_1, window_bounds = array<i64: 16, 128>}, {pipeline_mode = #tpu.pipeline_mode<synchronous>, transform_indices = @transform_2, window_bounds = array<i64: 1, 128>}, {pipeline_mode = #tpu.pipeline_mode<synchronous>, transform_indices = @transform_3, window_bounds = array<i64: 128, 128>}, {pipeline_mode = #tpu.pipeline_mode<synchronous>, transform_indices = @transform_4, window_bounds = array<i64: 1, 128>}, {pipeline_mode = #tpu.pipeline_mode<synchronous>, transform_indices = @transform_5, window_bounds = array<i64: 128, 128>}, {pipeline_mode = #tpu.pipeline_mode<synchronous>, transform_indices = @transform_6, window_bounds = array<i64: 1, 128>}, {pipeline_mode = #tpu.pipeline_mode<synchronous>, transform_indices = @transform_7, window_bounds = array<i64: 128, 128>}, {pipeline_mode = #tpu.pipeline_mode<synchronous>, transform_indices = @transform_8, window_bounds = array<i64: 1, 128>}, {pipeline_mode = #tpu.pipeline_mode<synchronous>, transform_indices = @transform_9, window_bounds = array<i64: 128, 128>}, {pipeline_mode = #tpu.pipeline_mode<synchronous>, transform_indices = @transform_10, window_bounds = array<i64: 1, 128>}, {pipeline_mode = #tpu.pipeline_mode<synchronous>, transform_indices = @transform_11, window_bounds = array<i64: 128, 32>}, {pipeline_mode = #tpu.pipeline_mode<synchronous>, transform_indices = @transform_12, window_bounds = array<i64: 1, 32>}, {transform_indices = @transform_13, window_bounds = array<i64: 2, 32>}]} {
    %c0 = arith.constant 0 : index
    %c0_0 = arith.constant 0 : index
    %0 = vector.load %arg1[%c0, %c0_0] : memref<2x16xf32, #tpu.memory_space<vmem>>, vector<2x16xf32>
    %c0_1 = arith.constant 0 : index
    %c0_2 = arith.constant 0 : index
    %1 = vector.load %arg2[%c0_1, %c0_2] : memref<16x128xf32, #tpu.memory_space<vmem>>, vector<16x128xf32>
    %cst = arith.constant dense<0.000000e+00> : vector<2x128xf32>
    %2 = tpu.matmul %0, %1, %cst {dimension_numbers = #tpu.dot_dimension_numbers<[1], [0], [0], [1], [0, 0, 1, 1], [], []>} : vector<2x16xf32>, vector<16x128xf32>, vector<2x128xf32> -> vector<2x128xf32>
    %c0_3 = arith.constant 0 : index
    %c0_4 = arith.constant 0 : index
    %3 = vector.load %arg3[%c0_3, %c0_4] : memref<1x128xf32, #tpu.memory_space<vmem>>, vector<1x128xf32>
    %4 = vector.broadcast %3 : vector<1x128xf32> to vector<2x128xf32>
    %5 = arith.addf %2, %4 : vector<2x128xf32>
    %cst_5 = arith.constant 0.000000e+00 : f32
    %6 = vector.broadcast %cst_5 : f32 to vector<2x128xf32>
    %7 = arith.maximumf %5, %6 : vector<2x128xf32>
    %c0_6 = arith.constant 0 : index
    %c0_7 = arith.constant 0 : index
    %8 = vector.load %arg4[%c0_6, %c0_7] : memref<128x128xf32, #tpu.memory_space<vmem>>, vector<128x128xf32>
    %cst_8 = arith.constant dense<0.000000e+00> : vector<2x128xf32>
    %9 = tpu.matmul %7, %8, %cst_8 {dimension_numbers = #tpu.dot_dimension_numbers<[1], [0], [0], [1], [0, 0, 1, 1], [], []>} : vector<2x128xf32>, vector<128x128xf32>, vector<2x128xf32> -> vector<2x128xf32>
    %c0_9 = arith.constant 0 : index
    %c0_10 = arith.constant 0 : index
    %10 = vector.load %arg5[%c0_9, %c0_10] : memref<1x128xf32, #tpu.memory_space<vmem>>, vector<1x128xf32>
    %11 = vector.broadcast %10 : vector<1x128xf32> to vector<2x128xf32>
    %12 = arith.addf %9, %11 : vector<2x128xf32>
    %cst_11 = arith.constant 0.000000e+00 : f32
    %13 = vector.broadcast %cst_11 : f32 to vector<2x128xf32>
    %14 = arith.maximumf %12, %13 : vector<2x128xf32>
    %c0_12 = arith.constant 0 : index
    %c0_13 = arith.constant 0 : index
    %15 = vector.load %arg6[%c0_12, %c0_13] : memref<128x128xf32, #tpu.memory_space<vmem>>, vector<128x128xf32>
    %cst_14 = arith.constant dense<0.000000e+00> : vector<2x128xf32>
    %16 = tpu.matmul %14, %15, %cst_14 {dimension_numbers = #tpu.dot_dimension_numbers<[1], [0], [0], [1], [0, 0, 1, 1], [], []>} : vector<2x128xf32>, vector<128x128xf32>, vector<2x128xf32> -> vector<2x128xf32>
    %c0_15 = arith.constant 0 : index
    %c0_16 = arith.constant 0 : index
    %17 = vector.load %arg7[%c0_15, %c0_16] : memref<1x128xf32, #tpu.memory_space<vmem>>, vector<1x128xf32>
    %18 = vector.broadcast %17 : vector<1x128xf32> to vector<2x128xf32>
    %19 = arith.addf %16, %18 : vector<2x128xf32>
    %20 = arith.addf %7, %19 : vector<2x128xf32>
    %cst_17 = arith.constant 0.000000e+00 : f32
    %21 = vector.broadcast %cst_17 : f32 to vector<2x128xf32>
    %22 = arith.maximumf %20, %21 : vector<2x128xf32>
    %c0_18 = arith.constant 0 : index
    %c0_19 = arith.constant 0 : index
    %23 = vector.load %arg8[%c0_18, %c0_19] : memref<128x128xf32, #tpu.memory_space<vmem>>, vector<128x128xf32>
    %cst_20 = arith.constant dense<0.000000e+00> : vector<2x128xf32>
    %24 = tpu.matmul %22, %23, %cst_20 {dimension_numbers = #tpu.dot_dimension_numbers<[1], [0], [0], [1], [0, 0, 1, 1], [], []>} : vector<2x128xf32>, vector<128x128xf32>, vector<2x128xf32> -> vector<2x128xf32>
    %c0_21 = arith.constant 0 : index
    %c0_22 = arith.constant 0 : index
    %25 = vector.load %arg9[%c0_21, %c0_22] : memref<1x128xf32, #tpu.memory_space<vmem>>, vector<1x128xf32>
    %26 = vector.broadcast %25 : vector<1x128xf32> to vector<2x128xf32>
    %27 = arith.addf %24, %26 : vector<2x128xf32>
    %cst_23 = arith.constant 0.000000e+00 : f32
    %28 = vector.broadcast %cst_23 : f32 to vector<2x128xf32>
    %29 = arith.maximumf %27, %28 : vector<2x128xf32>
    %c0_24 = arith.constant 0 : index
    %c0_25 = arith.constant 0 : index
    %30 = vector.load %arg10[%c0_24, %c0_25] : memref<128x128xf32, #tpu.memory_space<vmem>>, vector<128x128xf32>
    %cst_26 = arith.constant dense<0.000000e+00> : vector<2x128xf32>
    %31 = tpu.matmul %29, %30, %cst_26 {dimension_numbers = #tpu.dot_dimension_numbers<[1], [0], [0], [1], [0, 0, 1, 1], [], []>} : vector<2x128xf32>, vector<128x128xf32>, vector<2x128xf32> -> vector<2x128xf32>
    %c0_27 = arith.constant 0 : index
    %c0_28 = arith.constant 0 : index
    %32 = vector.load %arg11[%c0_27, %c0_28] : memref<1x128xf32, #tpu.memory_space<vmem>>, vector<1x128xf32>
    %33 = vector.broadcast %32 : vector<1x128xf32> to vector<2x128xf32>
    %34 = arith.addf %31, %33 : vector<2x128xf32>
    %35 = arith.negf %34 : vector<2x128xf32>
    %36 = math.exp %35 : vector<2x128xf32>
    %cst_29 = arith.constant 1.000000e+00 : f32
    %37 = vector.broadcast %cst_29 : f32 to vector<2x128xf32>
    %38 = arith.addf %37, %36 : vector<2x128xf32>
    %39 = arith.divf %37, %38 : vector<2x128xf32>
    %40 = arith.mulf %22, %39 : vector<2x128xf32>
    %c0_30 = arith.constant 0 : index
    %c0_31 = arith.constant 0 : index
    %41 = vector.load %arg12[%c0_30, %c0_31] : memref<128x32xf32, #tpu.memory_space<vmem>>, vector<128x32xf32>
    %cst_32 = arith.constant dense<0.000000e+00> : vector<2x32xf32>
    %42 = tpu.matmul %40, %41, %cst_32 {dimension_numbers = #tpu.dot_dimension_numbers<[1], [0], [0], [1], [0, 0, 1, 1], [], []>} : vector<2x128xf32>, vector<128x32xf32>, vector<2x32xf32> -> vector<2x32xf32>
    %c0_33 = arith.constant 0 : index
    %c0_34 = arith.constant 0 : index
    %43 = vector.load %arg13[%c0_33, %c0_34] : memref<1x32xf32, #tpu.memory_space<vmem>>, vector<1x32xf32>
    %44 = vector.broadcast %43 : vector<1x32xf32> to vector<2x32xf32>
    %45 = arith.addf %42, %44 : vector<2x32xf32>
    %c0_35 = arith.constant 0 : index
    %c0_36 = arith.constant 0 : index
    %46 = vector.load %arg14[%c0_35, %c0_36] : memref<2x32xf32, #tpu.memory_space<vmem>>, vector<2x32xf32>
    tpu.vector_store %arg14[%c0_35, %c0_36], %45 {strides = array<i32>} : memref<2x32xf32, #tpu.memory_space<vmem>>, vector<2x32xf32>,
    return
  }
  func.func @transform_0(%arg0: i32) -> (i32, i32) {
    %c0_i32 = arith.constant 0 : i32
    %c0_i32_0 = arith.constant 0 : i32
    return %arg0, %c0_i32 : i32, i32
  }
  func.func @transform_1(%arg0: i32) -> (i32, i32) {
    %c0_i32 = arith.constant 0 : i32
    %c0_i32_0 = arith.constant 0 : i32
    %c0_i32_1 = arith.constant 0 : i32
    return %c0_i32, %c0_i32_0 : i32, i32
  }
  func.func @transform_2(%arg0: i32) -> (i32, i32) {
    %c0_i32 = arith.constant 0 : i32
    %c0_i32_0 = arith.constant 0 : i32
    %c0_i32_1 = arith.constant 0 : i32
    return %c0_i32, %c0_i32_0 : i32, i32
  }
  func.func @transform_3(%arg0: i32) -> (i32, i32) {
    %c0_i32 = arith.constant 0 : i32
    %c0_i32_0 = arith.constant 0 : i32
    %c0_i32_1 = arith.constant 0 : i32
    return %c0_i32, %c0_i32_0 : i32, i32
  }
  func.func @transform_4(%arg0: i32) -> (i32, i32) {
    %c0_i32 = arith.constant 0 : i32
    %c0_i32_0 = arith.constant 0 : i32
    %c0_i32_1 = arith.constant 0 : i32
    return %c0_i32, %c0_i32_0 : i32, i32
  }
  func.func @transform_5(%arg0: i32) -> (i32, i32) {
    %c0_i32 = arith.constant 0 : i32
    %c0_i32_0 = arith.constant 0 : i32
    %c0_i32_1 = arith.constant 0 : i32
    return %c0_i32, %c0_i32_0 : i32, i32
  }
  func.func @transform_6(%arg0: i32) -> (i32, i32) {
    %c0_i32 = arith.constant 0 : i32
    %c0_i32_0 = arith.constant 0 : i32
    %c0_i32_1 = arith.constant 0 : i32
    return %c0_i32, %c0_i32_0 : i32, i32
  }
  func.func @transform_7(%arg0: i32) -> (i32, i32) {
    %c0_i32 = arith.constant 0 : i32
    %c0_i32_0 = arith.constant 0 : i32
    %c0_i32_1 = arith.constant 0 : i32
    return %c0_i32, %c0_i32_0 : i32, i32
  }
  func.func @transform_8(%arg0: i32) -> (i32, i32) {
    %c0_i32 = arith.constant 0 : i32
    %c0_i32_0 = arith.constant 0 : i32
    %c0_i32_1 = arith.constant 0 : i32
    return %c0_i32, %c0_i32_0 : i32, i32
  }
  func.func @transform_9(%arg0: i32) -> (i32, i32) {
    %c0_i32 = arith.constant 0 : i32
    %c0_i32_0 = arith.constant 0 : i32
    %c0_i32_1 = arith.constant 0 : i32
    return %c0_i32, %c0_i32_0 : i32, i32
  }
  func.func @transform_10(%arg0: i32) -> (i32, i32) {
    %c0_i32 = arith.constant 0 : i32
    %c0_i32_0 = arith.constant 0 : i32
    %c0_i32_1 = arith.constant 0 : i32
    return %c0_i32, %c0_i32_0 : i32, i32
  }
  func.func @transform_11(%arg0: i32) -> (i32, i32) {
    %c0_i32 = arith.constant 0 : i32
    %c0_i32_0 = arith.constant 0 : i32
    %c0_i32_1 = arith.constant 0 : i32
    return %c0_i32, %c0_i32_0 : i32, i32
  }
  func.func @transform_12(%arg0: i32) -> (i32, i32) {
    %c0_i32 = arith.constant 0 : i32
    %c0_i32_0 = arith.constant 0 : i32
    %c0_i32_1 = arith.constant 0 : i32
    return %c0_i32, %c0_i32_0 : i32, i32
  }
  func.func @transform_13(%arg0: i32) -> (i32, i32) {
    %c0_i32 = arith.constant 0 : i32
    %c0_i32_0 = arith.constant 0 : i32
    return %arg0, %c0_i32 : i32, i32
  }
}

</mosaic_0001>

<bundles_post_ra>
// kernel: tpu_custom_call.1
= control target key start
LH: loop header
LB: loop body
LE: loop exit
PB: predicated region body
PF: predicated region fallthrough
CT: control target
= control target key end

     0   :  { %18 = vsyncpa [#allocation3], 0  ;;  %s713_s0 = inlined_call_operand.vmem [shape: f32[2,16], index: 0, kind: input, shape index: {}]   ;;  %s714_s1 = inlined_call_operand.vmem [shape: f32[16,128], index: 1, kind: input, shape index: {}]   ;;  %s715_s2 = inlined_call_operand.vmem [shape: f32[1,128], index: 2, kind: input, shape index: {}]   ;;  %s716_s3 = inlined_call_operand.vmem [shape: f32[128,128], index: 3, kind: input, shape index: {}]   ;;  %s717_s4 = inlined_call_operand.vmem [shape: f32[1,128], index: 4, kind: input, shape index: {}]   ;;  %s718_s5 = inlined_call_operand.hbm [shape: f32[128,128], index: 5, kind: input, shape index: {}]   ;;  %s719_s6 = inlined_call_operand.vmem [shape: f32[1,128], index: 6, kind: input, shape index: {}]   ;;  %s720_s7 = inlined_call_operand.hbm [shape: f32[128,128], index: 7, kind: input, shape index: {}]   ;;  %s721_s8 = inlined_call_operand.vmem [shape: f32[1,128], index: 8, kind: input, shape index: {}]   ;;  %s722_s9 = inlined_call_operand.hbm [shape: f32[128,128], index: 9, kind: input, shape index: {}]   ;;  %s723_s10 = inlined_call_operand.vmem [shape: f32[1,128], index: 10, kind: input, shape index: {}]   ;;  %s724_s11 = inlined_call_operand.vmem [shape: f32[128,32], index: 11, kind: input, shape index: {}]   ;;  %s725_s12 = inlined_call_operand.vmem [shape: f32[1,32], index: 12, kind: input, shape index: {}]   ;;  %s726_s13 = inlined_call_operand.hbm [shape: f32[2,32], index: 13, kind: output, shape index: {}]  }
   0x1   :  { %19 = vsyncpa [#allocation6], 0 }
   0x2   :  { %20 = vsyncpa [#allocation4], 0  ;;  %s50_s27 = sshll.u32 %s720_s7, 4  ;;  %s488_s28 = smov [#allocation5]   ;;  %s51_s27 = int_to_ptr.hbm [resolvable:$true] %s50_s27 }
   0x3   :  { %s52_s29 = sshll.u32 %s488_s28, 4  ;;  %s35_s15 = sshll.u32 %s718_s5, 4  ;;  %s53_s29 = int_to_ptr.vmem [resolvable:$true] %s52_s29  ;;  %s36_s15 = int_to_ptr.hbm [resolvable:$true] %s35_s15 }
   0x4   :  { %s489_s16 = smov 128   ;;  %s490_s17 = smov 8  }
   0x5   :  { %58 = dma.hbm_to_vmem [thread:$0]  %s51_s27, 2048, %s53_s29, [#allocation6], %s489_s16, %s489_s16, %s490_s17  }
   0x6   :  { %s491_s18 = smov [#allocation2]   ;;  %s65_s22 = sshll.u32 %s722_s9, 4  ;;  %s66_s22 = int_to_ptr.hbm [resolvable:$true] %s65_s22 }
   0x7   :  { %s37_s19 = sshll.u32 %s491_s18, 4  ;;  %s492_s7 = smov [#allocation7]   ;;  %s38_s19 = int_to_ptr.vmem [resolvable:$true] %s37_s19 }
   0x8   :  { %43 = dma.hbm_to_vmem [thread:$0]  %s36_s15, 2048, %s38_s19, [#allocation3], %s489_s16, %s489_s16, %s490_s17  }
   0x9   :  { %s67_s23 = sshll.u32 %s492_s7, 4  ;;  %s68_s23 = int_to_ptr.vmem [resolvable:$true] %s67_s23 }
   0xa   :  { %73 = dma.hbm_to_vmem [thread:$0]  %s66_s22, 2048, %s68_s23, [#allocation6], %s489_s16, %s489_s16, %s490_s17  }
   0xb   :  { %482 = dma.done.wait [#allocation3], 2048  }
   0xc   :  { %483 = vsyncadd [#allocation3], 4294965248 }
   0xd   :  { %484 = dma.done.wait [#allocation6], 4096  }
   0xe   :  { %485 = vsyncadd [#allocation6], 4294963200  ;;  %v94_v0 = vld [vmem:[%s714_s1 + $0x8] sm:$0xff]  ;;  %v93_v1 = vld [vmem:[%s714_s1] sm:$0xff]  ;;  %vm99_vm0 = vcmask 130048   ;;  %s493_s9 = smov [#allocation8]  }
   0xf   :  { %117 = vmatpush.msra.mxu0 %v94_v0  ;;  %v92_v2 = vld [vmem:[%s713_s0] sm:$0x3]  ;;  %v139_v3 = vld [vmem:[%s716_s3 + $0x78] sm:$0xff]  ;;  %v138_v4 = vld [vmem:[%s716_s3 + $0x70] sm:$0xff]  ;;  %s355_s27 = sshll.u32 %s493_s9, 4  ;;  %s357_s30 = sshll.u32 %s726_s13, 4  ;;  %s356_s27 = int_to_ptr.vmem [resolvable:$true] %s355_s27  ;;  %s358_s30 = int_to_ptr.hbm [resolvable:$true] %s357_s30 }
  0x10   :  { %144 = vmatpush.msra.mxu1 %v139_v3  ;;  %v137_v5 = vld [vmem:[%s716_s3 + $0x68] sm:$0xff]  ;;  %v136_v6 = vld [vmem:[%s716_s3 + $0x60] sm:$0xff]  ;;  %v135_v7 = vld [vmem:[%s716_s3 + $0x58] sm:$0xff]  ;;  %vm348_vm5 = vcmask 254976  }
  0x11   :  { %118 = vmatpush.msra.mxu0 %v93_v1  ;;  %v134_v8 = vld [vmem:[%s716_s3 + $0x50] sm:$0xff]  ;;  %v133_v9 = vld [vmem:[%s716_s3 + $0x48] sm:$0xff]  ;;  %v132_v10 = vld [vmem:[%s716_s3 + $0x40] sm:$0xff] }
  0x12   :  { %368 = vmatmul.msk.f32.vlgmr.msra.gmra.mxu0 %vm99_vm0, %v92_v2  ;;  %145 = vmatpush.msra.mxu1 %v138_v4  ;;  %v131_v11 = vld [vmem:[%s716_s3 + $0x38] sm:$0xff]  ;;  %v130_v12 = vld [vmem:[%s716_s3 + $0x30] sm:$0xff]  ;;  %v129_v13 = vld [vmem:[%s716_s3 + $0x28] sm:$0xff] }
  0x13   :  { %v128_v14 = vld [vmem:[%s716_s3 + $0x20] sm:$0xff]  ;;  %v127_v15 = vld [vmem:[%s716_s3 + $0x18] sm:$0xff]  ;;  %v126_v16 = vld [vmem:[%s716_s3 + $0x10] sm:$0xff] }
  0x14   :  { %146 = vmatpush.msra.mxu1 %v137_v5  ;;  %v125_v17 = vld [vmem:[%s716_s3 + $0x8] sm:$0xff]  ;;  %v124_v18 = vld [vmem:[%s716_s3] sm:$0xff]  ;;  %v180_v19 = vld [vmem:[#allocation2 + $0x78] sm:$0xff] }
  0x15   :  { %v179_v20 = vld [vmem:[#allocation2 + $0x70] sm:$0xff]  ;;  %185 = vmatpush.msra.mxu2 %v180_v19  ;;  %v178_v21 = vld [vmem:[#allocation2 + $0x68] sm:$0xff]  ;;  %v177_v22 = vld [vmem:[#allocation2 + $0x60] sm:$0xff] }
  0x16   :  { %147 = vmatpush.msra.mxu1 %v136_v6  ;;  %v176_v23 = vld [vmem:[#allocation2 + $0x58] sm:$0xff]  ;;  %v175_v24 = vld [vmem:[#allocation2 + $0x50] sm:$0xff]  ;;  %v174_v25 = vld [vmem:[#allocation2 + $0x48] sm:$0xff] }
  0x17   :  { %186 = vmatpush.msra.mxu2 %v179_v20  ;;  %v173_v26 = vld [vmem:[#allocation2 + $0x40] sm:$0xff]  ;;  %v172_v27 = vld [vmem:[#allocation2 + $0x38] sm:$0xff]  ;;  %v171_v28 = vld [vmem:[#allocation2 + $0x30] sm:$0xff] }
  0x18   :  { %148 = vmatpush.msra.mxu1 %v135_v7  ;;  %v170_v29 = vld [vmem:[#allocation2 + $0x28] sm:$0xff]  ;;  %v169_v30 = vld [vmem:[#allocation2 + $0x20] sm:$0xff]  ;;  %v168_v31 = vld [vmem:[#allocation2 + $0x18] sm:$0xff] }
  0x19   :  { %187 = vmatpush.msra.mxu2 %v178_v21  ;;  %v376_v32 = vld [vmem:[%s715_s2] ss:$0 sm:$0xff]  ;;  %v167_v36 = vld [vmem:[#allocation2 + $0x10] sm:$0xff]  ;;  %v166_v37 = vld [vmem:[#allocation2 + $0x8] sm:$0xff] }
  0x1a   :  { %149 = vmatpush.msra.mxu1 %v134_v8  ;;  %v165_v38 = vld [vmem:[#allocation2] sm:$0xff]  ;;  %v222_v39 = vld [vmem:[#allocation5 + $0x78] sm:$0xff]  ;;  %v221_v40 = vld [vmem:[#allocation5 + $0x70] sm:$0xff] }
  0x1b   :  { %188 = vmatpush.msra.mxu2 %v177_v22  ;;  %227 = vmatpush.msra.mxu3 %v222_v39  ;;  %v220_v41 = vld [vmem:[#allocation5 + $0x68] sm:$0xff]  ;;  %v219_v42 = vld [vmem:[#allocation5 + $0x60] sm:$0xff]  ;;  %v218_v43 = vld [vmem:[#allocation5 + $0x58] sm:$0xff] }
  0x1c   :  { %150 = vmatpush.msra.mxu1 %v133_v9  ;;  %v217_v44 = vld [vmem:[#allocation5 + $0x50] sm:$0xff]  ;;  %v216_v45 = vld [vmem:[#allocation5 + $0x48] sm:$0xff]  ;;  %v215_v46 = vld [vmem:[#allocation5 + $0x40] sm:$0xff] }
  0x1d   :  { %189 = vmatpush.msra.mxu2 %v176_v23  ;;  %228 = vmatpush.msra.mxu3 %v221_v40  ;;  %v214_v47 = vld [vmem:[#allocation5 + $0x38] sm:$0xff]  ;;  %v213_v48 = vld [vmem:[#allocation5 + $0x30] sm:$0xff]  ;;  %v212_v49 = vld [vmem:[#allocation5 + $0x28] sm:$0xff] }
  0x1e   :  { %151 = vmatpush.msra.mxu1 %v132_v10  ;;  %v211_v50 = vld [vmem:[#allocation5 + $0x20] sm:$0xff]  ;;  %v210_v55 = vld [vmem:[#allocation5 + $0x18] sm:$0xff]  ;;  %v209_v56 = vld [vmem:[#allocation5 + $0x10] sm:$0xff] }
  0x1f   :  { %190 = vmatpush.msra.mxu2 %v175_v24  ;;  %229 = vmatpush.msra.mxu3 %v220_v41  ;;  %v377_v51 = vld [vmem:[%s717_s4] ss:$0 sm:$0xff]  ;;  %v208_v57 = vld [vmem:[#allocation5 + $0x8] sm:$0xff]  ;;  %v263_v59 = vld [vmem:[#allocation7 + $0x78] sm:$0xff] }
  0x20   :  { %152 = vmatpush.msra.mxu1 %v131_v11  ;;  %v207_v58 = vld [vmem:[#allocation5] sm:$0xff]  ;;  %v262_v60 = vld [vmem:[#allocation7 + $0x70] sm:$0xff]  ;;  %268 = vmatpush.msrb.mxu0 %v263_v59  ;;  %v261_v61 = vld [vmem:[#allocation7 + $0x68] sm:$0xff] }
  0x21   :  { %191 = vmatpush.msra.mxu2 %v174_v25  ;;  %230 = vmatpush.msra.mxu3 %v219_v42  ;;  %v260_v62 = vld [vmem:[#allocation7 + $0x60] sm:$0xff]  ;;  %v259_v63 = vld [vmem:[#allocation7 + $0x58] sm:$0xff]  ;;  %v258_v0 = vld [vmem:[#allocation7 + $0x50] sm:$0xff] }
  0x22   :  { %153 = vmatpush.msra.mxu1 %v130_v12  ;;  %269 = vmatpush.msrb.mxu0 %v262_v60  ;;  %v257_v1 = vld [vmem:[#allocation7 + $0x48] sm:$0xff]  ;;  %v256_v2 = vld [vmem:[#allocation7 + $0x40] sm:$0xff]  ;;  %v255_v3 = vld [vmem:[#allocation7 + $0x38] sm:$0xff] }
  0x23   :  { %192 = vmatpush.msra.mxu2 %v173_v26  ;;  %231 = vmatpush.msra.mxu3 %v218_v43  ;;  %v254_v4 = vld [vmem:[#allocation7 + $0x30] sm:$0xff]  ;;  %v253_v5 = vld [vmem:[#allocation7 + $0x28] sm:$0xff]  ;;  %v252_v6 = vld [vmem:[#allocation7 + $0x20] sm:$0xff] }
  0x24   :  { %154 = vmatpush.msra.mxu1 %v129_v13  ;;  %270 = vmatpush.msrb.mxu0 %v261_v61  ;;  %v378_v7 = vld [vmem:[%s719_s6] ss:$0 sm:$0xff]  ;;  %v251_v8 = vld [vmem:[#allocation7 + $0x18] sm:$0xff]  ;;  %v250_v13 = vld [vmem:[#allocation7 + $0x10] sm:$0xff] }
  0x25   :  { %193 = vmatpush.msra.mxu2 %v172_v27  ;;  %232 = vmatpush.msra.mxu3 %v217_v44  ;;  %v323_v20 = vld [vmem:[%s724_s11 + $0x78] sm:$0xff]  ;;  %v322_v21 = vld [vmem:[%s724_s11 + $0x70] sm:$0xff]  ;;  %v321_v22 = vld [vmem:[%s724_s11 + $0x68] sm:$0xff] }
  0x26   :  { %155 = vmatpush.msra.mxu1 %v128_v14  ;;  %271 = vmatpush.msrb.mxu0 %v260_v62  ;;  %v249_v14 = vld [vmem:[#allocation7 + $0x8] sm:$0xff]  ;;  %v320_v23 = vld [vmem:[%s724_s11 + $0x60] sm:$0xff]  ;;  %v319_v24 = vld [vmem:[%s724_s11 + $0x58] sm:$0xff] }
  0x27   :  { %194 = vmatpush.msra.mxu2 %v171_v28  ;;  %233 = vmatpush.msra.mxu3 %v216_v45  ;;  %v318_v25 = vld [vmem:[%s724_s11 + $0x50] sm:$0xff]  ;;  %v317_v26 = vld [vmem:[%s724_s11 + $0x48] sm:$0xff]  ;;  %v316_v27 = vld [vmem:[%s724_s11 + $0x40] sm:$0xff] }
  0x28   :  { %156 = vmatpush.msra.mxu1 %v127_v15  ;;  %272 = vmatpush.msrb.mxu0 %v259_v63  ;;  %v248_v15 = vld [vmem:[#allocation7] sm:$0xff]  ;;  %v315_v28 = vld [vmem:[%s724_s11 + $0x38] sm:$0xff] }
  0x29   :  { %195 = vmatpush.msra.mxu2 %v170_v29  ;;  %234 = vmatpush.msra.mxu3 %v215_v46  ;;  %v314_v29 = vld [vmem:[%s724_s11 + $0x30] sm:$0xff] }
  0x2a   :  { %157 = vmatpush.msra.mxu1 %v126_v16  ;;  %273 = vmatpush.msrb.mxu0 %v258_v0  ;;  %v379_v16 = vld [vmem:[%s721_s8] ss:$0 sm:$0xff] }
  0x2b   :  { %196 = vmatpush.msra.mxu2 %v169_v30  ;;  %235 = vmatpush.msra.mxu3 %v214_v47  ;;  %v313_v30 = vld [vmem:[%s724_s11 + $0x28] sm:$0xff] }
  0x2c   :  { %158 = vmatpush.msra.mxu1 %v125_v17  ;;  %274 = vmatpush.msrb.mxu0 %v257_v1 }
  0x2d   :  { %197 = vmatpush.msra.mxu2 %v168_v31  ;;  %236 = vmatpush.msra.mxu3 %v213_v48  ;;  %v312_v31 = vld [vmem:[%s724_s11 + $0x20] sm:$0xff] }
  0x2e   :  { %159 = vmatpush.msra.mxu1 %v124_v18  ;;  %275 = vmatpush.msrb.mxu0 %v256_v2 }
  0x2f   :  { %198 = vmatpush.msra.mxu2 %v167_v36  ;;  %237 = vmatpush.msra.mxu3 %v212_v49  ;;  %v308_v36 = vld [vmem:[%s724_s11] sm:$0xff] }
  0x30   :  { %276 = vmatpush.msrb.mxu0 %v255_v3  ;;  %328 = vmatpush.msrb.mxu1 %v323_v20 }
  0x31   :  { %199 = vmatpush.msra.mxu2 %v166_v37  ;;  %238 = vmatpush.msra.mxu3 %v211_v50 }
  0x32   :  { %277 = vmatpush.msrb.mxu0 %v254_v4  ;;  %329 = vmatpush.msrb.mxu1 %v322_v21 }
  0x33   :  { %200 = vmatpush.msra.mxu2 %v165_v38  ;;  %239 = vmatpush.msra.mxu3 %v210_v55 }
  0x34   :  { %278 = vmatpush.msrb.mxu0 %v253_v5  ;;  %330 = vmatpush.msrb.mxu1 %v321_v22 }
  0x35   :  { %240 = vmatpush.msra.mxu3 %v209_v56 }
  0x36   :  { %279 = vmatpush.msrb.mxu0 %v252_v6  ;;  %331 = vmatpush.msrb.mxu1 %v320_v23 }
  0x37   :  { %241 = vmatpush.msra.mxu3 %v208_v57 }
  0x38   :  { %280 = vmatpush.msrb.mxu0 %v251_v8  ;;  %332 = vmatpush.msrb.mxu1 %v319_v24 }
  0x39   :  { %242 = vmatpush.msra.mxu3 %v207_v58 }
  0x3a   :  { %281 = vmatpush.msrb.mxu0 %v250_v13  ;;  %333 = vmatpush.msrb.mxu1 %v318_v25 }
  0x3c   :  { %282 = vmatpush.msrb.mxu0 %v249_v14  ;;  %334 = vmatpush.msrb.mxu1 %v317_v26 }
  0x3e   :  { %283 = vmatpush.msrb.mxu0 %v248_v15  ;;  %335 = vmatpush.msrb.mxu1 %v316_v27 }
  0x40   :  { %336 = vmatpush.msrb.mxu1 %v315_v28 }
  0x42   :  { %337 = vmatpush.msrb.mxu1 %v314_v29 }
  0x44   :  { %338 = vmatpush.msrb.mxu1 %v313_v30 }
  0x46   :  { %339 = vmatpush.msrb.mxu1 %v312_v31 }
  0x8f   :  { %v120_v33 = vpop.f32.mrf.mxu0 }
  0x90   :  { %v633_v34 = vadd.f32 %v376_v32, %v120_v33  ;;  %v311_v32 = vld [vmem:[%s724_s11 + $0x18] sm:$0xff]  ;;  %v310_v33 = vld [vmem:[%s724_s11 + $0x10] sm:$0xff] }
  0x91   :  { %340 = vmatpush.msrb.mxu1 %v311_v32 }
  0x92   :  { %v123_v35 = vmax.f32 %v633_v34, 0.0  ;;  %v309_v34 = vld [vmem:[%s724_s11 + $0x8] sm:$0xff] }
  0x93   :  { %341 = vmatpush.msrb.mxu1 %v310_v33 }
  0x94   :  { %160 = vmatmul.f32.vlgmr.msra.gmra.mxu1 %v123_v35 }
  0x95   :  { %342 = vmatpush.msrb.mxu1 %v309_v34 }
  0x97   :  { %343 = vmatpush.msrb.mxu1 %v308_v36 }
 0x111   :  { %v161_v52 = vpop.f32.mrf.mxu1 }
 0x112   :  { %v162_v53 = vadd.f32 %v377_v51, %v161_v52 }
 0x114   :  { %v164_v54 = vmax.f32 %v162_v53, 0.0  ;;  %v381_v53 = vld [vmem:[%s725_s12] ss:$0 sm:$0xff] }
 0x116   :  { %201 = vmatmul.f32.vlgmr.msra.gmra.mxu2 %v164_v54 }
 0x199   :  { %v202_v9 = vpop.f32.mrf.mxu2 }
 0x19a   :  { %v203_v10 = vadd.f32 %v378_v7, %v202_v9 }
 0x19c   :  { %v646_v11 = vadd.f32 %v203_v10, %v123_v35  ;;  %v380_v35 = vld [vmem:[%s723_s10] ss:$0 sm:$0xff] }
 0x19e   :  { %v206_v12 = vmax.f32 %v646_v11, 0.0 }
 0x1a0   :  { %243 = vmatmul.f32.vlgmr.msra.gmra.mxu3 %v206_v12 }
 0x223   :  { %v244_v17 = vpop.f32.mrf.mxu3 }
 0x224   :  { %v245_v18 = vadd.f32 %v379_v16, %v244_v17 }
 0x226   :  { %v247_v19 = vmax.f32 %v245_v18, 0.0 }
 0x228   :  { %284 = vmatmul.f32.vlgmr.msrb.gmra.mxu0 %v247_v19 }
 0x2a5   :  { %v285_v37 = vpop.f32.mrf.mxu0 }
 0x2a6   :  { %v286_v38 = vadd.f32 %v380_v35, %v285_v37 }
 0x2a8   :  { %v369_v39 = vmul.f32 -1.442695, %v286_v38 }
 0x2aa   :  { %382 = vpow2.f32 %v369_v39 }
 0x2b0   :  { %v383_v40 = vpop.eup %382 }
 0x2b1   :  { %v291_v41 = vadd.f32 1.0, %v383_v40 }
 0x2b3   :  { %384 = vrcp.f32 %v291_v41  ;;  %v303_v45 = vand.u32 2147483648, %v291_v41  ;;  %v301_v47 = vand.u32 2147483647, %v291_v41  ;;  %vm297_vm2 = vweird.f32 %v291_v41 }
 0x2b5   :  { %v304_v49 = vor.u32 1.1754944e-38, %v303_v45  ;;  %vm302_vm4 = vcmp.eq.f32.partialorder %v301_v47, 8.507059e+37 }
 0x2b9   :  { %v385_v42 = vpop.eup %384 }
 0x2ba   :  { %v293_v43 = vmul.f32 %v385_v42, %v291_v41  ;;  %vm298_vm1 = vweird.f32 %v385_v42 }
 0x2bb   :  { %vm299_vm3 = vmor %vm297_vm2, %vm298_vm1 }
 0x2bc   :  { %v294_v44 = vsub.f32 1.0, %v293_v43 }
 0x2be   :  { %v295_v46 = vmul.f32 %v385_v42, %v294_v44 }
 0x2c0   :  { %v296_v48 = vadd.f32 %v385_v42, %v295_v46 }
 0x2c2   :  { %v300_v50 = vsel %vm299_vm3, %v385_v42, %v296_v48 }
 0x2c3   :  { %v305_v51 = vsel %vm302_vm4, %v304_v49, %v300_v50 }
 0x2c4   :  { %v307_v52 = vmul.f32 %v305_v51, %v206_v12 }
 0x2c6   :  { %344 = vmatmul.f32.vlgmr.msrb.gmra.mxu1 %v307_v52 }
 0x343   :  { %v345_v54 = vpop.f32.mrf.mxu1 }
 0x344   :  { %v346_v55 = vadd.f32 %v381_v53, %v345_v54 }
 0x346   :  { %349 = vst.msk [vmem:[#allocation8] sm:$0x3] %vm348_vm5, %v346_v55 }
 0x347   :  { %360 = dma.vmem_to_hbm [thread:$0]  %s356_s27, 32, %s358_s30, [#allocation4]  }
 0x348   :  { %486 = dma.done.wait [#allocation4], 32  }
 0x349   :  { %487 = vsyncadd [#allocation4], 4294967264 }
 0x34a   :  { %365 = vsyncpa [#allocation3], 1 }
 0x34b   :  { %366 = vsyncpa [#allocation6], 1 }
 0x34c   :  { %367 = vsyncpa [#allocation4], 1 }

</bundles_post_ra>
